<compile_context>
chip_gen: v7x
topology: tpu7x:2x2x1
jax: 0.10.0
libtpu: 0.0.40
codegen_flags: <defaults>
</compile_context>

<pallas_src>
import functools

import jax
import jax.numpy as jnp
from jax.experimental import pallas as pl
from jax.experimental.pallas import tpu as pltpu


def _view_kernel(TB, HW, E, feat_ref, wab_ref, bias_ref, v_ref, e_ref):
    """One grid step = one view x one batch tile (TB whole batch elements).

    Single fused matmul: Y = x @ [Wa | Wb] + [ba | bb].
    V = relu(Y[:, :E]);  e = relu(mean_over_HW(Y[:, E:]))  — the spatial mean
    commutes with the linear map, so pooling the matmul output is exactly the
    pooled-then-projected path of the original module.
    """
    x = feat_ref[...]                                       # (TB*HW, C) bf16
    y = jnp.dot(x, wab_ref[...],
                preferred_element_type=jnp.float32)         # (TB*HW, 2E) f32
    y = y + bias_ref[...]                                   # (1, 2E) broadcast
    v_ref[...] = jnp.maximum(y[:, :E], 0.0).astype(v_ref.dtype)
    pooled = jnp.mean(y[:, E:].reshape(TB, HW, E), axis=1)  # (TB, E)
    e_ref[...] = jnp.maximum(pooled, 0.0).astype(e_ref.dtype)


def prepare_params(params, compute_dtype=jnp.bfloat16):
    """One-time prep (call outside the forward pass): stack per-view weights
    and fuse [Wa | Wb] along the output axis so the forward does no per-call
    weight copies in HBM."""
    wab = jnp.stack([
        jnp.concatenate([params["waf"], params["wbf"]], axis=1),
        jnp.concatenate([params["wal"], params["wbl"]], axis=1),
    ]).astype(compute_dtype)                                 # (2, C, 2E)
    bias = jnp.stack([
        jnp.concatenate([params["baf"], params["bbf"]], axis=1),
        jnp.concatenate([params["bal"], params["bbl"]], axis=1),
    ]).astype(jnp.float32)                                   # (2, 1, 2E)
    return dict(wab=wab, bias=bias,
                wc=params["wc"].astype(jnp.float32),
                bc=params["bc"].astype(jnp.float32))


def visual_feature_extractor(a_frontal, a_lateral, prepped, *, batch_tile=None):
    """a_frontal / a_lateral: NCHW backbone feature maps (B, C, H, W)."""
    B, C, H, W = a_frontal.shape
    HW = H * W
    M = B * HW
    E = prepped["wab"].shape[2] // 2
    compute_dtype = prepped["wab"].dtype

    # Single fused stack+transpose: NCHW -> (2, B*HW, C) channels-last rows,
    # cast to bf16 (one copy; ideally the backbone would emit channels-last).
    feats = (jnp.stack([a_frontal, a_lateral])
             .reshape(2, B, C, HW)
             .transpose(0, 1, 3, 2)
             .reshape(2, M, C)
             .astype(compute_dtype))

    # Batch tile: whole batch elements per tile (pooling never crosses a tile
    # boundary), targeting ~512 rows per tile.
    if batch_tile is None:
        batch_tile = max(1, min(B, max(1, 512 // HW)))
        while B % batch_tile:
            batch_tile -= 1
    TB = batch_tile
    TM = TB * HW
    n_m = B // TB

    # Explicit VMEM budget: double-buffered feature/V/e tiles + resident
    # weights/bias, with headroom (scoped defaults are only 16/32 MiB).
    itemsize = jnp.dtype(compute_dtype).itemsize
    tile_bytes = (2 * TM * C * itemsize          # feature tile, 2 buffers
                  + 2 * TM * E * 4               # V tile, 2 buffers
                  + 2 * TB * E * 4               # e tile, 2 buffers
                  + C * 2 * E * itemsize         # fused weights (resident)
                  + 2 * E * 4)                   # bias
    vmem_limit = int(min(64 * 1024 * 1024, 2 * tile_bytes + (4 << 20)))

    v_all, e_all = pl.pallas_call(
        functools.partial(_view_kernel, TB, HW, E),
        out_shape=(
            jax.ShapeDtypeStruct((2, M, E), jnp.float32),
            jax.ShapeDtypeStruct((2, B, E), jnp.float32),
        ),
        grid_spec=pltpu.PrefetchScalarGridSpec(
            num_scalar_prefetch=0,
            grid=(2, n_m),                                   # (view, M tile)
            in_specs=[
                pl.BlockSpec((pl.Squeezed(), TM, C), lambda v, m: (v, m, 0)),
                pl.BlockSpec((pl.Squeezed(), C, 2 * E), lambda v, m: (v, 0, 0)),
                pl.BlockSpec((pl.Squeezed(), 1, 2 * E), lambda v, m: (v, 0, 0)),
            ],
            out_specs=(
                pl.BlockSpec((pl.Squeezed(), TM, E), lambda v, m: (v, m, 0)),
                pl.BlockSpec((pl.Squeezed(), TB, E), lambda v, m: (v, m, 0)),
            ),
        ),
        compiler_params=pltpu.CompilerParams(
            dimension_semantics=("parallel", "arbitrary"),
            vmem_limit_bytes=vmem_limit),
    )(feats, prepped["wab"], prepped["bias"])

    # Cross-view fusion affine is ~B*2E*E flops — plain jnp (XLA fuses it);
    # a separate pallas_call would cost more than the math and would
    # serialize onto one TensorCore. Two dots avoid the lane-axis concat.
    wc, bc = prepped["wc"], prepped["bc"]
    avg = jnp.maximum(e_all[0] @ wc[:E, :] + e_all[1] @ wc[E:, :] + bc, 0.0)

    v_frontal = v_all[0].reshape(B, HW, E)
    v_lateral = v_all[1].reshape(B, HW, E)
    return v_frontal, v_lateral, avg


def init_params(key, C, E):
    """Mimics init_weights(): uniform(-0.1, 0.1) weights, zero biases.
    Weights stored pre-transposed as (in, out) for x @ W."""
    ks = jax.random.split(key, 5)
    u = lambda k, shp: jax.random.uniform(k, shp, jnp.float32, -0.1, 0.1)
    return dict(
        waf=u(ks[0], (C, E)), baf=jnp.zeros((1, E), jnp.float32),
        wbf=u(ks[1], (C, E)), bbf=jnp.zeros((1, E), jnp.float32),
        wal=u(ks[2], (C, E)), bal=jnp.zeros((1, E), jnp.float32),
        wbl=u(ks[3], (C, E)), bbl=jnp.zeros((1, E), jnp.float32),
        wc=u(ks[4], (2 * E, E)), bc=jnp.zeros((1, E), jnp.float32),
    )


def _reference(a_f, a_l, p):
    B, C, H, W = a_f.shape
    f = a_f.reshape(B, C, H * W).transpose(0, 2, 1)
    l = a_l.reshape(B, C, H * W).transpose(0, 2, 1)
    relu = lambda x: jnp.maximum(x, 0.0)
    vf = relu(f @ p["waf"] + p["baf"])
    vl = relu(l @ p["wal"] + p["bal"])
    avg_f = relu(f.mean(axis=1) @ p["wbf"] + p["bbf"])
    avg_l = relu(l.mean(axis=1) @ p["wbl"] + p["bbl"])
    avg = relu(jnp.concatenate([avg_f, avg_l], axis=1) @ p["wc"] + p["bc"])
    return vf, vl, avg


if __name__ == "__main__":
    # Backbone-output-like shapes: (B, C, H, W) = (2, 256, 8, 8), embed = 128.
    B, C, H, W, E = 2, 256, 8, 8, 128
    key = jax.random.PRNGKey(0)
    k_af, k_al, k_p = jax.random.split(key, 3)
    a_frontal = jax.random.normal(k_af, (B, C, H, W), jnp.float32)
    a_lateral = jax.random.normal(k_al, (B, C, H, W), jnp.float32)
    params = init_params(k_p, C, E)
    prepped = prepare_params(params)          # one-time weight prep

    fn = jax.jit(visual_feature_extractor)
    v_f, v_l, avg = jax.block_until_ready(fn(a_frontal, a_lateral, prepped))

    rv_f, rv_l, ravg = _reference(a_frontal, a_lateral, params)
    assert v_f.shape == (B, H * W, E) and v_l.shape == (B, H * W, E)
    assert avg.shape == (B, E)
    # bf16 operands with f32 accumulation: loosened tolerance vs f32 reference.
    assert jnp.allclose(v_f, rv_f, atol=3e-2, rtol=3e-2)
    assert jnp.allclose(v_l, rv_l, atol=3e-2, rtol=3e-2)
    assert jnp.allclose(avg, ravg, atol=3e-2, rtol=3e-2)
    print("KERNEL_OK")
</pallas_src>

<mosaic_0001>
module attributes {stable_mosaic.version = 11 : i64} {
  func.func @_view_kernel(%arg0: i32, %arg1: i32, %arg2: memref<1x128x256xbf16, #tpu.memory_space<vmem>>, %arg3: memref<1x256x256xbf16, #tpu.memory_space<vmem>>, %arg4: memref<1x1x256xf32, #tpu.memory_space<vmem>>, %arg5: memref<1x128x128xf32, #tpu.memory_space<vmem>>, %arg6: memref<1x2x128xf32, #tpu.memory_space<vmem>>) attributes {dimension_semantics = [#tpu.dimension_semantics<parallel>, #tpu.dimension_semantics<arbitrary>], iteration_bounds = array<i64: 2, 1>, scalar_prefetch = 0 : i64, scratch_operands = 0 : i64, tpu.core_type = #tpu.core_type<tc>, window_params = [{transform_indices = @transform_0, window_bounds = array<i64: 1, 128, 256>}, {transform_indices = @transform_1, window_bounds = array<i64: 1, 256, 256>}, {transform_indices = @transform_2, window_bounds = array<i64: 1, 1, 256>}, {transform_indices = @transform_3, window_bounds = array<i64: 1, 128, 128>}, {transform_indices = @transform_4, window_bounds = array<i64: 1, 2, 128>}]} {
    %c0 = arith.constant 0 : index
    %c0_0 = arith.constant 0 : index
    %c0_1 = arith.constant 0 : index
    %0 = vector.load %arg2[%c0, %c0_0, %c0_1] : memref<1x128x256xbf16, #tpu.memory_space<vmem>>, vector<1x128x256xbf16>
    %1 = vector.shape_cast %0 : vector<1x128x256xbf16> to vector<128x256xbf16>
    %c0_2 = arith.constant 0 : index
    %c0_3 = arith.constant 0 : index
    %c0_4 = arith.constant 0 : index
    %2 = vector.load %arg3[%c0_2, %c0_3, %c0_4] : memref<1x256x256xbf16, #tpu.memory_space<vmem>>, vector<1x256x256xbf16>
    %3 = vector.shape_cast %2 : vector<1x256x256xbf16> to vector<256x256xbf16>
    %cst = arith.constant dense<0.000000e+00> : vector<128x256xf32>
    %4 = tpu.matmul %1, %3, %cst {dimension_numbers = #tpu.dot_dimension_numbers<[1], [0], [0], [1], [0, 0, 1, 1], [], []>} : vector<128x256xbf16>, vector<256x256xbf16>, vector<128x256xf32> -> vector<128x256xf32>
    %c0_5 = arith.constant 0 : index
    %c0_6 = arith.constant 0 : index
    %c0_7 = arith.constant 0 : index
    %5 = vector.load %arg4[%c0_5, %c0_6, %c0_7] : memref<1x1x256xf32, #tpu.memory_space<vmem>>, vector<1x1x256xf32>
    %6 = vector.shape_cast %5 : vector<1x1x256xf32> to vector<1x256xf32>
    %7 = vector.broadcast %6 : vector<1x256xf32> to vector<128x256xf32>
    %8 = arith.addf %4, %7 : vector<128x256xf32>
    %9 = vector.extract_strided_slice %8 {offsets = [0, 0], sizes = [128, 128], strides = [1, 1]} : vector<128x256xf32> to vector<128x128xf32>
    %cst_8 = arith.constant 0.000000e+00 : f32
    %10 = vector.broadcast %cst_8 : f32 to vector<128x128xf32>
    %11 = arith.maximumf %9, %10 : vector<128x128xf32>
    %c0_9 = arith.constant 0 : index
    %c0_10 = arith.constant 0 : index
    %c0_11 = arith.constant 0 : index
    %12 = vector.load %arg5[%c0_9, %c0_10, %c0_11] : memref<1x128x128xf32, #tpu.memory_space<vmem>>, vector<1x128x128xf32>
    %13 = vector.shape_cast %12 : vector<1x128x128xf32> to vector<128x128xf32>
    %14 = vector.shape_cast %11 : vector<128x128xf32> to vector<1x128x128xf32>
    tpu.vector_store %arg5[%c0_9, %c0_10, %c0_11], %14 {strides = array<i32>} : memref<1x128x128xf32, #tpu.memory_space<vmem>>, vector<1x128x128xf32>,
    %15 = vector.extract_strided_slice %8 {offsets = [0, 128], sizes = [128, 128], strides = [1, 1]} : vector<128x256xf32> to vector<128x128xf32>
    %16 = vector.shape_cast %15 : vector<128x128xf32> to vector<2x64x128xf32>
    %cst_12 = arith.constant dense<0.000000e+00> : vector<2x128xf32>
    %17 = vector.multi_reduction <add>, %16, %cst_12 [1] : vector<2x64x128xf32> to vector<2x128xf32>
    %cst_13 = arith.constant 6.400000e+01 : f32
    %18 = vector.broadcast %cst_13 : f32 to vector<2x128xf32>
    %19 = arith.divf %17, %18 : vector<2x128xf32>
    %cst_14 = arith.constant 0.000000e+00 : f32
    %20 = vector.broadcast %cst_14 : f32 to vector<2x128xf32>
    %21 = arith.maximumf %19, %20 : vector<2x128xf32>
    %c0_15 = arith.constant 0 : index
    %c0_16 = arith.constant 0 : index
    %c0_17 = arith.constant 0 : index
    %22 = vector.load %arg6[%c0_15, %c0_16, %c0_17] : memref<1x2x128xf32, #tpu.memory_space<vmem>>, vector<1x2x128xf32>
    %23 = vector.shape_cast %22 : vector<1x2x128xf32> to vector<2x128xf32>
    %24 = vector.shape_cast %21 : vector<2x128xf32> to vector<1x2x128xf32>
    tpu.vector_store %arg6[%c0_15, %c0_16, %c0_17], %24 {strides = array<i32>} : memref<1x2x128xf32, #tpu.memory_space<vmem>>, vector<1x2x128xf32>,
    return
  }
  func.func @transform_0(%arg0: i32, %arg1: i32) -> (i32, i32, i32) {
    %c0_i32 = arith.constant 0 : i32
    %c0_i32_0 = arith.constant 0 : i32
    return %arg0, %arg1, %c0_i32 : i32, i32, i32
  }
  func.func @transform_1(%arg0: i32, %arg1: i32) -> (i32, i32, i32) {
    %c0_i32 = arith.constant 0 : i32
    %c0_i32_0 = arith.constant 0 : i32
    %c0_i32_1 = arith.constant 0 : i32
    return %arg0, %c0_i32, %c0_i32_0 : i32, i32, i32
  }
  func.func @transform_2(%arg0: i32, %arg1: i32) -> (i32, i32, i32) {
    %c0_i32 = arith.constant 0 : i32
    %c0_i32_0 = arith.constant 0 : i32
    %c0_i32_1 = arith.constant 0 : i32
    return %arg0, %c0_i32, %c0_i32_0 : i32, i32, i32
  }
  func.func @transform_3(%arg0: i32, %arg1: i32) -> (i32, i32, i32) {
    %c0_i32 = arith.constant 0 : i32
    %c0_i32_0 = arith.constant 0 : i32
    return %arg0, %arg1, %c0_i32 : i32, i32, i32
  }
  func.func @transform_4(%arg0: i32, %arg1: i32) -> (i32, i32, i32) {
    %c0_i32 = arith.constant 0 : i32
    %c0_i32_0 = arith.constant 0 : i32
    return %arg0, %arg1, %c0_i32 : i32, i32, i32
  }
}

</mosaic_0001>

<bundles_post_ra>
// kernel: visual_feature_extractor.1
= control target key start
LH: loop header
LB: loop body
LE: loop exit
PB: predicated region body
PF: predicated region fallthrough
CT: control target
= control target key end

     0   :  { %s1176_s15 = smov 0   ;;  %s1178_s16 = smov 0   ;;  %s1337_s0 = inlined_call_operand.vmem [shape: bf16[2,128,256], index: 0, kind: input, shape index: {}]   ;;  %s1338_s1 = inlined_call_operand.vmem [shape: bf16[2,256,256], index: 1, kind: input, shape index: {}]   ;;  %s1339_s2 = inlined_call_operand.vmem [shape: f32[2,1,256], index: 2, kind: input, shape index: {}]   ;;  %s1340_s3 = inlined_call_operand.vmem [shape: f32[2,128,128], index: 3, kind: output, shape index: {0}]   ;;  %s1341_s4 = inlined_call_operand.vmem [shape: f32[2,2,128], index: 4, kind: output, shape index: {1}]  }
   0x1   :  { %s1180_s17 = smov 0  }
   0x2 LB: > { %s27_s18 = sadd.s32 1, %s1145_s16  ;;  %p937_p0 = scmp.ge.s32.totalorder %s1149_s17, 1  ;;  %s1149_s17 = sphi %s1180_s17, %s15_s17   ;;  %s1145_s16 = sphi %s1178_s16, %s1343_s16   ;;  %s1141_s15 = sphi %s1176_s15, %s1342_s15  }
   0x3   : > { %p29_p1 = scmp.ge.s32.totalorder %s27_s18, 2  ;;  %p208_p2 = scmp.lt.s32.totalorder %s1149_s17, 3 }
   0x5   : > { %s1345_s18 = smov (%p29_p1, %s27_s18), 0  ;;  %p209_p3 = pnand %p937_p0, %p208_p2 }
   0x6   : > { %p260_p4 = scmp.lt.s32.totalorder (!%p209_p3), %s1141_s15, 1  ;;  %v346_v48 = vlaneseq (!%p209_p3)  ;;  %vm774_vm0 = vcmask (!%p209_p3), 1041409  }
   0x7   : > { %212 = sbr.rel (%p209_p3) target bundleno = 343 (0x157), region = 32 }
   0x8   : > { %v347_v49 = vshrl.u32 (!%p209_p3), %v346_v48, 7 }
   0xa   : > { %v348_v50 = vsub.s32 (!%p209_p3), 0, %v347_v49  ;;  %v352_v52 = vsub.s32 (!%p209_p3), 1, %v347_v49 }
   0xe   : > { %s1347_s15 = smov (!%p260_p4, %s1141_s15), 1 }
   0xf   : > { %s997_s19 = sshll.u32 %s1347_s15, 8  ;;  %s996_s23 = sshll.u32 %s1347_s15, 7 }
  0x10   : > { %s1200_s22 = scalar_lea.vmem %s1338_s1, %s997_s19  ;;  %s1220_s26 = scalar_lea.vmem %s1337_s0, %s996_s23 }
  0x11   : > { %v1055_v0 = vld [vmem:[%s1200_s22 + $0x4] ss:$8 sps:$4 sm:$0xff]   ;;  %v1057_v1 = vld [vmem:[%s1200_s22] ss:$8 sps:$4 sm:$0xff]   ;;  %v1058_v2 = vld [vmem:[%s1200_s22 + $0x14] ss:$8 sps:$4 sm:$0xff]   ;;  %s1275_s7 = scalar_lea.vmem %s1340_s3, %s996_s23 }
  0x12   : > { %596 = vmatprep.subr.bf16.mxu0 %v1055_v0  ;;  %999 = vmatprep.subr.bf16.mxu1 %v1055_v0  ;;  %v1060_v3 = vld [vmem:[%s1200_s22 + $0x10] ss:$8 sps:$4 sm:$0xff]   ;;  %v1061_v4 = vld [vmem:[%s1200_s22 + $0x24] ss:$8 sps:$4 sm:$0xff]   ;;  %v1063_v5 = vld [vmem:[%s1200_s22 + $0x20] ss:$8 sps:$4 sm:$0xff]  }
  0x13   : > { %597 = vmatpush1.bf16.msra.mxu0 %v1057_v1  ;;  %1015 = vmatpush1.bf16.msra.mxu1 %v1057_v1  ;;  %v1064_v6 = vld [vmem:[%s1200_s22 + $0x34] ss:$8 sps:$4 sm:$0xff]   ;;  %v1066_v7 = vld [vmem:[%s1200_s22 + $0x30] ss:$8 sps:$4 sm:$0xff]   ;;  %v1067_v8 = vld [vmem:[%s1200_s22 + $0x44] ss:$8 sps:$4 sm:$0xff]  }
  0x14   : > { %598 = vmatprep.subr.bf16.mxu0 %v1058_v2  ;;  %1000 = vmatprep.subr.bf16.mxu1 %v1058_v2  ;;  %v1069_v9 = vld [vmem:[%s1200_s22 + $0x40] ss:$8 sps:$4 sm:$0xff]   ;;  %v1070_v10 = vld [vmem:[%s1200_s22 + $0x54] ss:$8 sps:$4 sm:$0xff]   ;;  %v1072_v11 = vld [vmem:[%s1200_s22 + $0x50] ss:$8 sps:$4 sm:$0xff]  }
  0x15   : > { %v1073_v12 = vld [vmem:[%s1200_s22 + $0x64] ss:$8 sps:$4 sm:$0xff]   ;;  %v1075_v14 = vld [vmem:[%s1200_s22 + $0x60] ss:$8 sps:$4 sm:$0xff]   ;;  %v1076_v16 = vld [vmem:[%s1200_s22 + $0x74] ss:$8 sps:$4 sm:$0xff]  }
  0x16   : > { %v1105_v13 = vld [vmem:[%s1220_s26 + $0x4] ss:$8 sps:$4 sm:$0xff]   ;;  %v1078_v17 = vld [vmem:[%s1200_s22 + $0x70] ss:$8 sps:$4 sm:$0xff]   ;;  %v1081_v19 = vld [vmem:[%s1200_s22 + $0x80] ss:$8 sps:$4 sm:$0xff]  }
  0x17   : > { %599 = vmatpush1.bf16.msra.mxu0 %v1060_v3  ;;  %1016 = vmatpush1.bf16.msra.mxu1 %v1060_v3  ;;  %v1108_v15 = vld [vmem:[%s1220_s26 + $0x44] ss:$8 sps:$4 sm:$0xff]   ;;  %v1082_v20 = vld [vmem:[%s1200_s22 + $0x94] ss:$8 sps:$4 sm:$0xff]   ;;  %v1084_v21 = vld [vmem:[%s1200_s22 + $0x90] ss:$8 sps:$4 sm:$0xff]  }
  0x18   : > { %600 = vmatprep.subr.bf16.mxu0 %v1061_v4  ;;  %1001 = vmatprep.subr.bf16.mxu1 %v1061_v4  ;;  %v1079_v18 = vld [vmem:[%s1200_s22 + $0x84] ss:$8 sps:$4 sm:$0xff]   ;;  %v1087_v23 = vld [vmem:[%s1200_s22 + $0xa0] ss:$8 sps:$4 sm:$0xff]   ;;  %v1088_v24 = vld [vmem:[%s1200_s22 + $0xb4] ss:$8 sps:$4 sm:$0xff]  }
  0x19   : > { %628 = vmatprep.mubr.bf16.mxu0 %v1105_v13  ;;  %668 = vmatprep.mubr.bf16.mxu1 %v1108_v15  ;;  %v1085_v22 = vld [vmem:[%s1200_s22 + $0xa4] ss:$8 sps:$4 sm:$0xff]   ;;  %v1090_v25 = vld [vmem:[%s1200_s22 + $0xb0] ss:$8 sps:$4 sm:$0xff]   ;;  %v1093_v27 = vld [vmem:[%s1200_s22 + $0xc0] ss:$8 sps:$4 sm:$0xff]  }
  0x1a   : > { %v1091_v26 = vld [vmem:[%s1200_s22 + $0xc4] ss:$8 sps:$4 sm:$0xff]   ;;  %v1094_v28 = vld [vmem:[%s1200_s22 + $0xd4] ss:$8 sps:$4 sm:$0xff]   ;;  %v1096_v29 = vld [vmem:[%s1200_s22 + $0xd0] ss:$8 sps:$4 sm:$0xff]  }
  0x1b   : > { %601 = vmatpush1.bf16.msra.mxu0 %v1063_v5  ;;  %1017 = vmatpush1.bf16.msra.mxu1 %v1063_v5  ;;  %v1097_v30 = vld [vmem:[%s1200_s22 + $0xe4] ss:$8 sps:$4 sm:$0xff]   ;;  %v1099_v31 = vld [vmem:[%s1200_s22 + $0xe0] ss:$8 sps:$4 sm:$0xff]   ;;  %v1100_v32 = vld [vmem:[%s1200_s22 + $0xf4] ss:$8 sps:$4 sm:$0xff]  }
  0x1c   : > { %602 = vmatprep.subr.bf16.mxu0 %v1064_v6  ;;  %1002 = vmatprep.subr.bf16.mxu1 %v1064_v6  ;;  %v1102_v33 = vld [vmem:[%s1200_s22 + $0xf0] ss:$8 sps:$4 sm:$0xff]   ;;  %v1103_v34 = vld [vmem:[%s1220_s26] ss:$8 sps:$4 sm:$0xff]   ;;  %v1109_v36 = vld [vmem:[%s1220_s26 + $0x14] ss:$8 sps:$4 sm:$0xff]  }
  0x1d   : > { %v1106_v35 = vld [vmem:[%s1220_s26 + $0x40] ss:$8 sps:$4 sm:$0xff]   ;;  %v1111_v37 = vld [vmem:[%s1220_s26 + $0x54] ss:$8 sps:$4 sm:$0xff]   ;;  %v1113_v38 = vld [vmem:[%s1220_s26 + $0x10] ss:$8 sps:$4 sm:$0xff]  }
  0x1e   : > { %v1114_v39 = vld [vmem:[%s1220_s26 + $0x50] ss:$8 sps:$4 sm:$0xff]   ;;  %v1115_v40 = vld [vmem:[%s1220_s26 + $0x24] ss:$8 sps:$4 sm:$0xff]   ;;  %v1119_v42 = vld [vmem:[%s1220_s26 + $0x20] ss:$8 sps:$4 sm:$0xff]  }
  0x1f   : > { %603 = vmatpush1.bf16.msra.mxu0 %v1066_v7  ;;  %1018 = vmatpush1.bf16.msra.mxu1 %v1066_v7  ;;  %v1117_v41 = vld [vmem:[%s1220_s26 + $0x64] ss:$8 sps:$4 sm:$0xff]   ;;  %v1120_v43 = vld [vmem:[%s1220_s26 + $0x60] ss:$8 sps:$4 sm:$0xff]   ;;  %v1121_v44 = vld [vmem:[%s1220_s26 + $0x34] ss:$8 sps:$4 sm:$0xff]  }
  0x20   : > { %604 = vmatprep.subr.bf16.mxu0 %v1067_v8  ;;  %1003 = vmatprep.subr.bf16.mxu1 %v1067_v8  ;;  %v1123_v45 = vld [vmem:[%s1220_s26 + $0x74] ss:$8 sps:$4 sm:$0xff]   ;;  %v1125_v46 = vld [vmem:[%s1220_s26 + $0x30] ss:$8 sps:$4 sm:$0xff]   ;;  %s942_s27 = sshll.u32 %s1347_s15, 1 }
  0x21   : > { %v1126_v47 = vld [vmem:[%s1220_s26 + $0x70] ss:$8 sps:$4 sm:$0xff]   ;;  %s278_s30 = scalar_lea.vmem %s1339_s2, %s942_s27  ;;  %s295_s10 = scalar_lea.vmem %s1341_s4, %s942_s27 }
  0x22   : > { %v344_v51 = vld [vmem:[%s278_s30] sm:$0x3] }
  0x23   : > { %605 = vmatpush1.bf16.msra.mxu0 %v1069_v9  ;;  %1019 = vmatpush1.bf16.msra.mxu1 %v1069_v9  ;;  %v1264_v53 = vrot.slane %v344_v51, %v348_v50  ;;  %v1266_v54 = vrot.slane %v344_v51, %v352_v52 }
  0x24   : > { %606 = vmatprep.subr.bf16.mxu0 %v1070_v10  ;;  %1004 = vmatprep.subr.bf16.mxu1 %v1070_v10 }
  0x27   : > { %607 = vmatpush1.bf16.msra.mxu0 %v1072_v11  ;;  %1020 = vmatpush1.bf16.msra.mxu1 %v1072_v11 }
  0x28   : > { %608 = vmatprep.subr.bf16.mxu0 %v1073_v12  ;;  %1005 = vmatprep.subr.bf16.mxu1 %v1073_v12 }
  0x2b   : > { %609 = vmatpush1.bf16.msra.mxu0 %v1075_v14  ;;  %1021 = vmatpush1.bf16.msra.mxu1 %v1075_v14 }
  0x2c   : > { %610 = vmatprep.subr.bf16.mxu0 %v1076_v16  ;;  %1006 = vmatprep.subr.bf16.mxu1 %v1076_v16 }
  0x2f   : > { %611 = vmatpush1.bf16.msra.mxu0 %v1078_v17  ;;  %1022 = vmatpush1.bf16.msra.mxu1 %v1078_v17 }
  0x30   : > { %612 = vmatprep.subr.bf16.mxu0 %v1079_v18  ;;  %1007 = vmatprep.subr.bf16.mxu1 %v1079_v18 }
  0x33   : > { %613 = vmatpush1.bf16.msra.mxu0 %v1081_v19  ;;  %1023 = vmatpush1.bf16.msra.mxu1 %v1081_v19 }
  0x34   : > { %614 = vmatprep.subr.bf16.mxu0 %v1082_v20  ;;  %1008 = vmatprep.subr.bf16.mxu1 %v1082_v20 }
  0x37   : > { %615 = vmatpush1.bf16.msra.mxu0 %v1084_v21  ;;  %1024 = vmatpush1.bf16.msra.mxu1 %v1084_v21 }
  0x38   : > { %616 = vmatprep.subr.bf16.mxu0 %v1085_v22  ;;  %1009 = vmatprep.subr.bf16.mxu1 %v1085_v22 }
  0x3b   : > { %617 = vmatpush1.bf16.msra.mxu0 %v1087_v23  ;;  %1025 = vmatpush1.bf16.msra.mxu1 %v1087_v23 }
  0x3c   : > { %618 = vmatprep.subr.bf16.mxu0 %v1088_v24  ;;  %1010 = vmatprep.subr.bf16.mxu1 %v1088_v24 }
  0x3f   : > { %619 = vmatpush1.bf16.msra.mxu0 %v1090_v25  ;;  %1026 = vmatpush1.bf16.msra.mxu1 %v1090_v25 }
  0x40   : > { %620 = vmatprep.subr.bf16.mxu0 %v1091_v26  ;;  %1011 = vmatprep.subr.bf16.mxu1 %v1091_v26 }
  0x43   : > { %621 = vmatpush1.bf16.msra.mxu0 %v1093_v27  ;;  %1027 = vmatpush1.bf16.msra.mxu1 %v1093_v27 }
  0x44   : > { %622 = vmatprep.subr.bf16.mxu0 %v1094_v28  ;;  %1012 = vmatprep.subr.bf16.mxu1 %v1094_v28 }
  0x47   : > { %623 = vmatpush1.bf16.msra.mxu0 %v1096_v29  ;;  %1028 = vmatpush1.bf16.msra.mxu1 %v1096_v29 }
  0x48   : > { %624 = vmatprep.subr.bf16.mxu0 %v1097_v30  ;;  %1013 = vmatprep.subr.bf16.mxu1 %v1097_v30 }
  0x4b   : > { %625 = vmatpush1.bf16.msra.mxu0 %v1099_v31  ;;  %1029 = vmatpush1.bf16.msra.mxu1 %v1099_v31 }
  0x4c   : > { %626 = vmatprep.subr.bf16.mxu0 %v1100_v32  ;;  %1014 = vmatprep.subr.bf16.mxu1 %v1100_v32 }
  0x4f   : > { %627 = vmatpush1.bf16.msra.mxu0 %v1102_v33  ;;  %1030 = vmatpush1.bf16.msra.mxu1 %v1102_v33 }
  0x52   : > { %629 = vmatmul.mubr.bf16.vlgmr.msra.gmra.mrb[0].mxu0 %v1103_v34  ;;  %669 = vmatmul.mubr.bf16.vlgmr.msra.gmra.mrb[0].mxu1 %v1106_v35 }
  0x53   : > { %638 = vmatprep.mubr.bf16.mxu0 %v1109_v36  ;;  %678 = vmatprep.mubr.bf16.mxu1 %v1111_v37 }
  0x5a   : > { %639 = vmatmul.mubr.bf16.gmra.mrb[4].mxu0 %v1113_v38  ;;  %679 = vmatmul.mubr.bf16.gmra.mrb[4].mxu1 %v1114_v39 }
  0x5b   : > { %648 = vmatprep.mubr.bf16.mxu0 %v1115_v40  ;;  %688 = vmatprep.mubr.bf16.mxu1 %v1117_v41 }
  0x62   : > { %649 = vmatmul.mubr.bf16.gmra.mrb[8].mxu0 %v1119_v42  ;;  %689 = vmatmul.mubr.bf16.gmra.mrb[8].mxu1 %v1120_v43 }
  0x63   : > { %658 = vmatprep.mubr.bf16.mxu0 %v1121_v44  ;;  %698 = vmatprep.mubr.bf16.mxu1 %v1123_v45 }
  0x6a   : > { %659 = vmatmul.mubr.bf16.gmra.mrb[12].mxu0 %v1125_v46  ;;  %699 = vmatmul.mubr.bf16.gmra.mrb[12].mxu1 %v1126_v47 }
 0x125   : > { %v630_v55 = vpop.f32.mrb[0].mxu0  ;;  %v670_v56 = vpop.f32.mrb[0].mxu1 }
 0x126   : > { %v631_v57 = vadd.f32 %v630_v55, %v1264_v53  ;;  %v671_v58 = vadd.f32 %v670_v56, %v1264_v53  ;;  %v632_v59 = vpop.f32.mrb[1].mxu0  ;;  %v672_v60 = vpop.f32.mrb[1].mxu1 }
 0x127   : > { %v633_v61 = vadd.f32 %v632_v59, %v1266_v54  ;;  %v673_v62 = vadd.f32 %v672_v60, %v1266_v54  ;;  %v634_v63 = vpop.f32.mrb[2].mxu0  ;;  %v674_v0 = vpop.f32.mrb[2].mxu1 }
 0x128   : > { %v709_v1 = vmax.f32 %v631_v57, 0.0  ;;  %v717_v2 = vmax.f32 %v671_v58, 0.0  ;;  %v635_v3 = vadd.f32 %v634_v63, %v1264_v53  ;;  %v675_v4 = vadd.f32 %v674_v0, %v1264_v53  ;;  %v636_v5 = vpop.f32.mrb[3].mxu0  ;;  %v676_v6 = vpop.f32.mrb[3].mxu1 }
 0x129   : > { %v637_v7 = vadd.f32 %v636_v5, %v1266_v54  ;;  %v677_v8 = vadd.f32 %v676_v6, %v1266_v54 }
 0x12a   : > { %725 = vst [vmem:[%s1275_s7] sm:$0xff] %v709_v1  ;;  %733 = vst [vmem:[%s1275_s7 + $0x40] sm:$0xff] %v717_v2  ;;  %v710_v9 = vmax.f32 %v635_v3, 0.0  ;;  %v718_v10 = vmax.f32 %v675_v4, 0.0 }
 0x12b   : > { %v741_v11 = vadd.f32 %v637_v7, %v633_v61  ;;  %v754_v12 = vadd.f32 %v677_v8, %v673_v62 }
 0x12c   : > { %726 = vst [vmem:[%s1275_s7 + $0x8] sm:$0xff] %v710_v9  ;;  %734 = vst [vmem:[%s1275_s7 + $0x48] sm:$0xff] %v718_v10 }
 0x12d   : > { %v640_v13 = vpop.f32.mrb[4].mxu0  ;;  %v680_v14 = vpop.f32.mrb[4].mxu1 }
 0x12e   : > { %v641_v15 = vadd.f32 %v640_v13, %v1264_v53  ;;  %v681_v16 = vadd.f32 %v680_v14, %v1264_v53  ;;  %v642_v17 = vpop.f32.mrb[5].mxu0  ;;  %v682_v18 = vpop.f32.mrb[5].mxu1 }
 0x12f   : > { %v643_v19 = vadd.f32 %v642_v17, %v1266_v54  ;;  %v683_v20 = vadd.f32 %v682_v18, %v1266_v54  ;;  %v644_v21 = vpop.f32.mrb[6].mxu0  ;;  %v684_v22 = vpop.f32.mrb[6].mxu1 }
 0x130   : > { %v711_v23 = vmax.f32 %v641_v15, 0.0  ;;  %v719_v24 = vmax.f32 %v681_v16, 0.0  ;;  %v645_v25 = vadd.f32 %v644_v21, %v1264_v53  ;;  %v685_v26 = vadd.f32 %v684_v22, %v1264_v53  ;;  %v646_v27 = vpop.f32.mrb[7].mxu0  ;;  %v686_v28 = vpop.f32.mrb[7].mxu1 }
 0x131   : > { %v742_v29 = vadd.f32 %v741_v11, %v643_v19  ;;  %v755_v30 = vadd.f32 %v754_v12, %v683_v20  ;;  %v647_v31 = vadd.f32 %v646_v27, %v1266_v54  ;;  %v687_v32 = vadd.f32 %v686_v28, %v1266_v54 }
 0x132   : > { %727 = vst [vmem:[%s1275_s7 + $0x10] sm:$0xff] %v711_v23  ;;  %735 = vst [vmem:[%s1275_s7 + $0x50] sm:$0xff] %v719_v24  ;;  %v712_v33 = vmax.f32 %v645_v25, 0.0  ;;  %v720_v34 = vmax.f32 %v685_v26, 0.0 }
 0x133   : > { %v743_v35 = vadd.f32 %v742_v29, %v647_v31  ;;  %v756_v36 = vadd.f32 %v755_v30, %v687_v32 }
 0x134   : > { %728 = vst [vmem:[%s1275_s7 + $0x18] sm:$0xff] %v712_v33  ;;  %736 = vst [vmem:[%s1275_s7 + $0x58] sm:$0xff] %v720_v34 }
 0x135   : > { %v650_v37 = vpop.f32.mrb[8].mxu0  ;;  %v690_v38 = vpop.f32.mrb[8].mxu1 }
 0x136   : > { %v651_v39 = vadd.f32 %v650_v37, %v1264_v53  ;;  %v691_v40 = vadd.f32 %v690_v38, %v1264_v53  ;;  %v652_v41 = vpop.f32.mrb[9].mxu0  ;;  %v692_v42 = vpop.f32.mrb[9].mxu1 }
 0x137   : > { %v653_v43 = vadd.f32 %v652_v41, %v1266_v54  ;;  %v693_v44 = vadd.f32 %v692_v42, %v1266_v54  ;;  %v654_v45 = vpop.f32.mrb[10].mxu0  ;;  %v694_v46 = vpop.f32.mrb[10].mxu1 }
 0x138   : > { %v713_v47 = vmax.f32 %v651_v39, 0.0  ;;  %v721_v48 = vmax.f32 %v691_v40, 0.0  ;;  %v655_v49 = vadd.f32 %v654_v45, %v1264_v53  ;;  %v695_v50 = vadd.f32 %v694_v46, %v1264_v53  ;;  %v656_v51 = vpop.f32.mrb[11].mxu0  ;;  %v696_v52 = vpop.f32.mrb[11].mxu1 }
 0x139   : > { %v744_v55 = vadd.f32 %v743_v35, %v653_v43  ;;  %v757_v56 = vadd.f32 %v756_v36, %v693_v44  ;;  %v657_v57 = vadd.f32 %v656_v51, %v1266_v54  ;;  %v697_v58 = vadd.f32 %v696_v52, %v1266_v54 }
 0x13a   : > { %729 = vst [vmem:[%s1275_s7 + $0x20] sm:$0xff] %v713_v47  ;;  %737 = vst [vmem:[%s1275_s7 + $0x60] sm:$0xff] %v721_v48  ;;  %v714_v59 = vmax.f32 %v655_v49, 0.0  ;;  %v722_v60 = vmax.f32 %v695_v50, 0.0 }
 0x13b   : > { %v745_v61 = vadd.f32 %v744_v55, %v657_v57  ;;  %v758_v62 = vadd.f32 %v757_v56, %v697_v58 }
 0x13c   : > { %730 = vst [vmem:[%s1275_s7 + $0x28] sm:$0xff] %v714_v59  ;;  %738 = vst [vmem:[%s1275_s7 + $0x68] sm:$0xff] %v722_v60 }
 0x13d   : > { %v660_v63 = vpop.f32.mrb[12].mxu0  ;;  %v700_v0 = vpop.f32.mrb[12].mxu1 }
 0x13e   : > { %v661_v1 = vadd.f32 %v660_v63, %v1264_v53  ;;  %v701_v2 = vadd.f32 %v700_v0, %v1264_v53  ;;  %v662_v3 = vpop.f32.mrb[13].mxu0  ;;  %v702_v4 = vpop.f32.mrb[13].mxu1 }
 0x13f   : > { %v663_v5 = vadd.f32 %v662_v3, %v1266_v54  ;;  %v703_v6 = vadd.f32 %v702_v4, %v1266_v54  ;;  %v664_v7 = vpop.f32.mrb[14].mxu0  ;;  %v704_v8 = vpop.f32.mrb[14].mxu1 }
 0x140   : > { %v715_v9 = vmax.f32 %v661_v1, 0.0  ;;  %v723_v10 = vmax.f32 %v701_v2, 0.0  ;;  %v665_v11 = vadd.f32 %v664_v7, %v1264_v53  ;;  %v705_v12 = vadd.f32 %v704_v8, %v1264_v53  ;;  %v666_v13 = vpop.f32.mrb[15].mxu0  ;;  %v706_v14 = vpop.f32.mrb[15].mxu1 }
 0x141   : > { %v746_v15 = vadd.f32 %v745_v61, %v663_v5  ;;  %v759_v16 = vadd.f32 %v758_v62, %v703_v6  ;;  %v667_v17 = vadd.f32 %v666_v13, %v1266_v54  ;;  %v707_v18 = vadd.f32 %v706_v14, %v1266_v54 }
 0x142   : > { %731 = vst [vmem:[%s1275_s7 + $0x30] sm:$0xff] %v715_v9  ;;  %739 = vst [vmem:[%s1275_s7 + $0x70] sm:$0xff] %v723_v10  ;;  %v716_v19 = vmax.f32 %v665_v11, 0.0  ;;  %v724_v20 = vmax.f32 %v705_v12, 0.0 }
 0x143   : > { %v747_v21 = vadd.f32 %v746_v15, %v667_v17  ;;  %v760_v22 = vadd.f32 %v759_v16, %v707_v18 }
 0x144   : > { %732 = vst [vmem:[%s1275_s7 + $0x38] sm:$0xff] %v716_v19  ;;  %740 = vst [vmem:[%s1275_s7 + $0x78] sm:$0xff] %v724_v20 }
 0x145   : > { %v748_v23 = vrot.slane %v747_v21, 4  ;;  %v761_v24 = vrot.slane %v760_v22, 4 }
 0x147   : > { %v749_v53 = vadd.f32 %v748_v23, %v747_v21  ;;  %v762_v25 = vadd.f32 %v761_v24, %v760_v22 }
 0x149   : > { %v750_v26 = vrot.slane %v749_v53, 2  ;;  %v763_v27 = vrot.slane %v762_v25, 2 }
 0x14b   : > { %v751_v28 = vadd.f32 %v750_v26, %v749_v53  ;;  %v764_v29 = vadd.f32 %v763_v27, %v762_v25 }
 0x14d   : > { %v752_v30 = vrot.slane %v751_v28, 1  ;;  %v765_v31 = vrot.slane %v764_v29, 1 }
 0x14f   : > { %v753_v54 = vadd.f32 %v752_v30, %v751_v28  ;;  %v766_v32 = vadd.f32 %v765_v31, %v764_v29 }
 0x151   : > { %v768_v33 = vmul.f32 0.015625, %v753_v54  ;;  %v769_v34 = vmul.f32 0.015625, %v766_v32 }
 0x153   : > { %v770_v35 = vmax.f32 %v768_v33, 0.0  ;;  %v771_v36 = vmax.f32 %v769_v34, 0.0 }
 0x155   : > { %v775_v37 = vsel %vm774_vm0, %v771_v36, %v770_v35 }
 0x156   : > { %777 = vst [vmem:[%s295_s10] sm:$0x3] %v775_v37 }
 0x157 PF: > { %s15_s17 = sadd.s32 1, %s1149_s17   ;;  %s1342_s15 = smov %s1145_s16 }
 0x158   : > { %p12_p5 = scmp.ge.s32.totalorder %s15_s17, 4   ;;  %s1343_s16 = smov %s1345_s18 }
 0x15a   :  { %14 = sbr.rel (!%p12_p5) target bundleno = 2 (0x2), region = 80 }

</bundles_post_ra>
